<compile_context>
chip_gen: v7x
topology: tpu7x:2x2x1
jax: 0.10.0
libtpu: 0.0.40
codegen_flags: <defaults>
</compile_context>

<pallas_src>
import functools

import jax
import jax.numpy as jnp
from jax.experimental import pallas as pl
from jax.experimental.pallas import tpu as pltpu

_LANE = 128      # vreg lane width
_SUBLANE = 8     # vreg sublanes for 32-bit dtypes


def _cdiv(a, b):
    return -(-a // b)


def _round_up(x, m):
    return _cdiv(x, m) * m


def _round_down(x, m):
    return (x // m) * m


def _chip_profile():
    """Per-generation (tile_budget_bytes, vmem_limit_bytes_or_None, want_two_blocks)."""
    kind = ""
    try:
        kind = jax.devices()[0].device_kind.lower()
    except Exception:
        pass
    if "v7" in kind or "tpu7" in kind:
        # 3.2 TB/s HBM makes the ~0.35 us/step overhead a big tax at 2 MiB tiles.
        # 6 MiB tiles -> ~36 MiB double-buffered footprint (incl. padded pos),
        # kept under a 48 MiB limit of the 64 MiB physical VMEM. 2 TCs -> want >=2 blocks.
        return 6 << 20, 48 << 20, True
    if "v6" in kind:
        # 4 MiB tiles -> ~24 MiB footprint, fits the 32 MiB default scoped VMEM.
        return 4 << 20, None, False
    # v5e and unknown chips: 2 MiB tiles -> ~12 MiB footprint, fits the 16 MiB
    # default scoped VMEM; HBM is slow enough that step overhead is already small.
    return 2 << 20, None, False


def _add_bcast_kernel(x_ref, pos_ref, o_ref):
    # x: (tb, tc), pos: (1, tc) broadcast over sublanes. Single read-add-store.
    o_ref[...] = x_ref[...] + pos_ref[...]


def _add_fold_kernel(x_ref, pos_ref, o_ref, *, reps):
    # x: (tb, tc) whose rows cycle through the r pos rows; pos: (r, tc).
    pos = pos_ref[...]
    if reps > 1:
        pos = jnp.concatenate([pos] * reps, axis=0)   # (tb, tc); reps = tb // r, small
    o_ref[...] = x_ref[...] + pos


def _sublane_multiple(itemsize):
    # Packed dtypes need a larger second-minor multiple (bf16 -> 16, int8 -> 32).
    return _SUBLANE * max(1, 4 // itemsize)


def _pick_row_fold(B, F, sub):
    """Fold factor r (a power of two dividing `sub`): reshape x to (B*r, F/r) so
    tiny batches don't leave most vreg sublanes / VMEM rows as padding."""
    if B >= sub or F % _LANE != 0:
        return 1
    want = _cdiv(sub, B)
    feasible = [c for c in (2, 4, 8, 16, 32)
                if c <= sub and sub % c == 0
                and F % c == 0 and (F // c) % _LANE == 0]
    at_least = [c for c in feasible if c >= want]
    if at_least:
        return min(at_least)
    return max(feasible) if feasible else 1


def _pick_tiles(R, C, itemsize, sub, tile_budget):
    """Pick (tb, tc) with each x/out tile <= tile_budget bytes.

    tc is lane-aligned (or the full extent); tb is sublane-aligned (or the full
    extent). Double-buffered VMEM footprint, counting the sublane-padded pos
    block, stays <= 6 * tile_budget."""
    cap_c = max(_LANE, _round_down(tile_budget // (sub * itemsize), _LANE))
    if C % _LANE == 0:
        tc = min(C, cap_c)
    else:
        # Full-extent minor dim if it fits; otherwise a 128-aligned tile with a
        # partial (masked) last column block via the cdiv grid.
        tc = C if C <= cap_c else cap_c
    max_rows = max(sub, tile_budget // (tc * itemsize))
    if R <= max_rows:
        tb = R                                   # full extent: always legal
    else:
        tb = max(sub, _round_down(max_rows, sub))  # sublane-aligned, never full batch
    return tb, tc


def positional_embedding_1d(x: jax.Array, pos_embedding: jax.Array,
                            *, alias_input: bool = False) -> jax.Array:
    """x: (B, S, D); pos_embedding: (1, S, D). Returns x + pos_embedding."""
    B, S, D = x.shape
    assert pos_embedding.shape == (1, S, D), pos_embedding.shape

    # Explicit dtype handling: keep the kernel a single same-dtype VPU add.
    pos = pos_embedding.astype(x.dtype)
    itemsize = jnp.dtype(x.dtype).itemsize
    sub = _sublane_multiple(itemsize)
    tile_budget, vmem_limit, want_two_blocks = _chip_profile()

    F = S * D
    r = _pick_row_fold(B, F, sub)      # 1 unless B < sub and F/r stays lane-aligned
    R, C = B * r, F // r

    x2 = x.reshape(R, C)
    p2 = pos.reshape(r, C)

    tb, tc = _pick_tiles(R, C, itemsize, sub, tile_budget)

    n_col, n_row = _cdiv(C, tc), _cdiv(R, tb)
    if want_two_blocks and n_col * n_row < 2:
        # v7x has two TensorCores: make sure a degenerate grid still has >=2
        # parallel blocks (harmless elsewhere; only triggers on 1-block grids).
        if C % _LANE == 0 and C >= 2 * _LANE:
            tc = _round_up(_cdiv(C, 2), _LANE)
            n_col = _cdiv(C, tc)
        elif R >= 2 * sub:
            tb = _round_up(_cdiv(R, 2), sub)
            n_row = _cdiv(R, tb)

    grid = (n_col, n_row)   # column tiles OUTER, row tiles INNER -> pos stays resident

    if r == 1:
        kernel = _add_bcast_kernel
    else:
        kernel = functools.partial(_add_fold_kernel, reps=tb // r)

    cp_kwargs = dict(dimension_semantics=("parallel", "parallel"))
    if vmem_limit is not None:
        cp_kwargs["vmem_limit_bytes"] = int(vmem_limit)

    out2 = pl.pallas_call(
        kernel,
        out_shape=jax.ShapeDtypeStruct((R, C), x.dtype),
        grid_spec=pltpu.PrefetchScalarGridSpec(
            num_scalar_prefetch=0,
            grid=grid,
            in_specs=[
                # x tile: varies with both grid axes.
                pl.BlockSpec((tb, tc), lambda j, i: (i, j)),
                # pos tile: depends only on the OUTER (column) axis, so it stays
                # resident in VMEM across the inner row/batch loop.
                pl.BlockSpec((r, tc), lambda j, i: (0, j)),
            ],
            out_specs=pl.BlockSpec((tb, tc), lambda j, i: (i, j)),
        ),
        compiler_params=pltpu.CompilerParams(**cp_kwargs),
        cost_estimate=pl.CostEstimate(
            flops=B * S * D,
            transcendentals=0,
            bytes_accessed=(2 * B * S * D + S * D) * itemsize,
        ),
        input_output_aliases=({0: 0} if alias_input else {}),
    )(x2, p2)
    return out2.reshape(B, S, D)


if __name__ == "__main__":
    key = jax.random.PRNGKey(0)

    def check(B, S, D, dtype=jnp.float32):
        kx, kp = jax.random.split(jax.random.fold_in(key, B * 10000 + S * 100 + D))
        x = jax.random.normal(kx, (B, S, D), dtype=dtype)
        # nn.Parameter(torch.zeros(...)) is zeros in the module; use nonzero
        # values so the add is observable.
        pos = jax.random.normal(kp, (1, S, D), dtype=dtype)
        out = jax.block_until_ready(positional_embedding_1d(x, pos))
        ref = x + pos
        assert out.shape == (B, S, D)
        assert out.dtype == x.dtype
        assert jnp.allclose(out, ref, atol=1e-6, rtol=1e-6), (B, S, D)
        return out

    # Module-consistent small shape: batch=2, seq_len=8, dim=32 (row-fold path).
    check(2, 8, 32)
    # Batch >= sublane multiple -> plain broadcast path.
    check(8, 8, 16)
    # S*D not a multiple of 128 -> full-extent column block path.
    check(2, 8, 24)

    print("KERNEL_OK")
</pallas_src>

<mosaic_0001>
module attributes {stable_mosaic.version = 11 : i64} {
  func.func @_add_fold_kernel(%arg0: i32, %arg1: i32, %arg2: memref<4x128xf32, #tpu.memory_space<vmem>>, %arg3: memref<2x128xf32, #tpu.memory_space<vmem>>, %arg4: memref<4x128xf32, #tpu.memory_space<vmem>>) attributes {dimension_semantics = [#tpu.dimension_semantics<parallel>, #tpu.dimension_semantics<parallel>], iteration_bounds = array<i64: 1, 1>, scalar_prefetch = 0 : i64, scratch_operands = 0 : i64, tpu.core_type = #tpu.core_type<tc>, window_params = [{transform_indices = @transform_0, window_bounds = array<i64: 4, 128>}, {transform_indices = @transform_1, window_bounds = array<i64: 2, 128>}, {transform_indices = @transform_2, window_bounds = array<i64: 4, 128>}]} {
    %c0 = arith.constant 0 : index
    %c0_0 = arith.constant 0 : index
    %0 = vector.load %arg3[%c0, %c0_0] : memref<2x128xf32, #tpu.memory_space<vmem>>, vector<2x128xf32>
    %1 = tpu.concatenate %0, %0 in 0 : vector<2x128xf32>, vector<2x128xf32> -> vector<4x128xf32>
    %c0_1 = arith.constant 0 : index
    %c0_2 = arith.constant 0 : index
    %2 = vector.load %arg2[%c0_1, %c0_2] : memref<4x128xf32, #tpu.memory_space<vmem>>, vector<4x128xf32>
    %3 = arith.addf %2, %1 : vector<4x128xf32>
    %c0_3 = arith.constant 0 : index
    %c0_4 = arith.constant 0 : index
    %4 = vector.load %arg4[%c0_3, %c0_4] : memref<4x128xf32, #tpu.memory_space<vmem>>, vector<4x128xf32>
    tpu.vector_store %arg4[%c0_3, %c0_4], %3 {strides = array<i32>} : memref<4x128xf32, #tpu.memory_space<vmem>>, vector<4x128xf32>,
    return
  }
  func.func @transform_0(%arg0: i32, %arg1: i32) -> (i32, i32) {
    %c0_i32 = arith.constant 0 : i32
    return %arg1, %arg0 : i32, i32
  }
  func.func @transform_1(%arg0: i32, %arg1: i32) -> (i32, i32) {
    %c0_i32 = arith.constant 0 : i32
    %c0_i32_0 = arith.constant 0 : i32
    return %c0_i32, %arg0 : i32, i32
  }
  func.func @transform_2(%arg0: i32, %arg1: i32) -> (i32, i32) {
    %c0_i32 = arith.constant 0 : i32
    return %arg1, %arg0 : i32, i32
  }
}

</mosaic_0001>

<bundles_post_ra>
// kernel: tpu_custom_call.1
= control target key start
LH: loop header
LB: loop body
LE: loop exit
PB: predicated region body
PF: predicated region fallthrough
CT: control target
= control target key end

     0   :  { %7 = vsyncpa [#allocation3], 0  ;;  %s142_s0 = inlined_call_operand.hbm [shape: f32[4,128], index: 0, kind: input, shape index: {}]   ;;  %s143_s1 = inlined_call_operand.vmem [shape: f32[2,128], index: 1, kind: input, shape index: {}]   ;;  %s144_s2 = inlined_call_operand.hbm [shape: f32[4,128], index: 2, kind: output, shape index: {}]  }
   0x1   :  { %8 = vsyncpa [#allocation4], 0  ;;  %s98_s9 = smov [#allocation2]   ;;  %s50_s13 = scalar_lea.hbm %s142_s0, 64 }
   0x2   :  { %s15_s10 = sshll.u32 %s98_s9, 4  ;;  %p51_p0 = scmp.ne.s32.totalorder %s142_s0, %s50_s13  ;;  %s16_s10 = int_to_ptr.vmem [resolvable:$true] %s15_s10 }
   0x3   :  { %p54_p1 = scmp.lt.u32.totalorder %s50_s13, %s142_s0 }
   0x5   :  { %p56_p2 = pnand %p54_p1, %p51_p0 }
   0x7   :  { %59 = shalt.err (!%p56_p2)
}
   0x8   :  { %s60_s18 = scalar_lea.vmem %s16_s10, 64  ;;  %p65_p4 = scmp.lt.s32.totalorder %s16_s10, %s16_s10 }
   0x9   :  { %p61_p3 = scmp.ne.s32.totalorder %s16_s10, %s60_s18  ;;  %p66_p5 = scmp.lt.s32.totalorder %s60_s18, %s60_s18 }
   0xb   :  { %p67_p6 = por %p66_p5, %p65_p4 }
   0xd   :  { %p68_p7 = pnand %p67_p6, %p61_p3 }
   0xf   :  { %71 = shalt.err (!%p68_p7)
}
  0x10   :  { %18 = dma.hbm_to_vmem [thread:$0]  %s142_s0, 64, %s16_s10, [#allocation3]  }
  0x11   :  { %94 = dma.done.wait [#allocation3], 64  }
  0x12   :  { %95 = vsyncadd [#allocation3], 4294967232  ;;  %v24_v0 = vld [vmem:[%s143_s1] sm:$0x3]  ;;  %vm28_vm0 = vcmask 1041408   ;;  %s99_s23 = smov [#allocation5]  }
  0x13   :  { %v26_v1 = vrot.slane %v24_v0, 6  ;;  %v30_v2 = vld [vmem:[#allocation2] sm:$0xf]  ;;  %s39_s24 = sshll.u32 %s99_s23, 4  ;;  %s40_s24 = int_to_ptr.vmem [resolvable:$true] %s39_s24 }
  0x14   :  { %s72_s25 = scalar_lea.vmem %s40_s24, 64  ;;  %p77_p9 = scmp.lt.s32.totalorder %s40_s24, %s40_s24 }
  0x15   :  { %v29_v3 = vsel %vm28_vm0, %v24_v0, %v26_v1  ;;  %p73_p8 = scmp.ne.s32.totalorder %s40_s24, %s72_s25  ;;  %p78_p10 = scmp.lt.s32.totalorder %s72_s25, %s72_s25 }
  0x16   :  { %v31_v4 = vadd.f32 %v30_v2, %v29_v3 }
  0x17   :  { %p79_p11 = por %p78_p10, %p77_p9 }
  0x18   :  { %32 = vst [vmem:[#allocation5] sm:$0xf] %v31_v4 }
  0x19   :  { %p80_p12 = pnand %p79_p11, %p73_p8 }
  0x1b   :  { %83 = shalt.err (!%p80_p12)
}
  0x1c   :  { %s84_s1 = scalar_lea.hbm %s144_s2, 64 }
  0x1d   :  { %p85_p13 = scmp.ne.s32.totalorder %s144_s2, %s84_s1  ;;  %p88_p0 = scmp.lt.u32.totalorder %s84_s1, %s144_s2 }
  0x1f   :  { %p90_p1 = pnand %p88_p0, %p85_p13 }
  0x21   :  { %93 = shalt.err (!%p90_p1)
}
  0x22   :  { %42 = dma.vmem_to_hbm [thread:$0]  %s40_s24, 64, %s144_s2, [#allocation4]  }
  0x23   :  { %96 = dma.done.wait [#allocation4], 64  }
  0x24   :  { %97 = vsyncadd [#allocation4], 4294967232 }
  0x25   :  { %46 = vsyncpa [#allocation3], 1 }
  0x26   :  { %47 = vsyncpa [#allocation4], 1 }

</bundles_post_ra>
